<compile_context>
chip_gen: v6e
topology: v6e:2x2x1
jax: 0.10.0
libtpu: 0.0.40
codegen_flags: <defaults>
</compile_context>

<pallas_src>
import functools

import jax
import jax.numpy as jnp
from jax.experimental import pallas as pl
from jax.experimental.pallas import tpu as pltpu


def _round_up(n: int, m: int) -> int:
    return ((n + m - 1) // m) * m


def _pick_chunk(D: int, tb: int, order: int) -> int:
    """Lane-chunk width so accumulators + temps stay within ~40 vregs."""
    sub_groups = -(-D // 8)
    for cand in (512, 256):
        if tb % cand == 0 and (order + 4) * sub_groups * (cand // 128) <= 40:
            return cand
    return 128


def _interaction_machine_kernel(x_ref, w_ref, b_ref, y_ref, *, order: int,
                                num_fields: int, chunk: int):
    """One batch tile.

    x_ref: (F, D, TB)    VMEM  fields x embedding_dim x batch (batch on lanes)
    w_ref: (order, D, 1) VMEM  fc weights per polynomial order / embed dim
    b_ref: (1, 1)        SMEM  fc bias
    y_ref: (1, TB)       VMEM  lane-dense output row
    """
    D = x_ref.shape[1]
    tb = x_ref.shape[2]
    n_chunks = tb // chunk

    bias = b_ref[0, 0]
    # Hoist + lane-broadcast the fc weights ONCE per invocation (JAX does not
    # CSE broadcast_in_dim; doing this inside the chunk loop re-materializes).
    w_b = [jnp.broadcast_to(w_ref[k], (D, chunk)) for k in range(order)]

    @pl.loop(0, n_chunks)
    def _(c):
        base = pl.multiple_of(c * chunk, chunk)

        def load(f):
            return x_ref[f, :, pl.ds(base, chunk)].astype(jnp.float32)

        # ---- streaming power sums over fields; accumulators stay in vregs ----
        x0 = load(0)                              # (D, chunk) f32
        p = [x0]                                  # p[k-1] = sum_f x_f^k
        q = x0
        for _ in range(1, order):
            q = q * x0
            p.append(q)
        for f in range(1, num_fields):
            xf = load(f)                          # cast exactly once per field
            p[0] = p[0] + xf
            q = xf
            for k in range(1, order):
                q = q * xf
                p[k] = p[k] + q

        # ---- Newton's-identity polynomials fused with the Linear head -------
        p1 = p[0]
        acc = p1 * w_b[0]
        if order >= 2:
            p2 = p[1]
            acc = acc + ((p1 * p1 - p2) * 0.5) * w_b[1]
        if order >= 3:
            p3 = p[2]
            acc = acc + ((p1 * p1 * p1 - 3.0 * p1 * p2 + 2.0 * p3)
                         * (1.0 / 6.0)) * w_b[2]
        if order >= 4:
            p4 = p[3]
            p1_2 = p1 * p1
            acc = acc + ((p1_2 * p1_2 - 6.0 * p1_2 * p2 + 3.0 * p2 * p2
                          + 8.0 * p1 * p3 - 6.0 * p4) * (1.0 / 24.0)) * w_b[3]
        if order >= 5:
            p5 = p[4]
            p1_2 = p1 * p1
            acc = acc + ((p1_2 * p1_2 * p1 - 10.0 * p1_2 * p1 * p2
                          + 20.0 * p1_2 * p3 - 30.0 * p1 * p4 - 20.0 * p2 * p3
                          + 15.0 * p1 * (p2 * p2) + 24.0 * p5)
                         * (1.0 / 120.0)) * w_b[4]

        # One sublane (D-axis) reduce -> lane-dense (1, chunk) output slice.
        y_ref[:, pl.ds(base, chunk)] = (
            jnp.sum(acc, axis=0, keepdims=True) + bias)


def interaction_machine(x, fc_weight, fc_bias, *, order: int = 2,
                        block_b: int = 8192, cast_to=jnp.bfloat16):
    """Pallas InteractionMachine forward.

    x:         (B, F, D)      embeddings (cast to `cast_to` for HBM traffic)
    fc_weight: (1, order*D)   PyTorch nn.Linear weight layout (out, in)
    fc_bias:   (1,)
    returns:   (B, 1) float32
    """
    assert 1 <= order < 6
    B, F, D = x.shape
    assert fc_weight.shape == (1, order * D)

    # TODO(synk): batch_norm=True path (nn.BatchNorm1d) not implemented; module default is False.

    # Weights as (order, D, 1): each order's weights broadcast over lanes.
    w = fc_weight.astype(jnp.float32).reshape(order, D)[:, :, None]
    b = fc_bias.reshape(1, 1).astype(jnp.float32)

    # Fuse bf16 cast + tiny 128-alignment pad + transpose into one XLA pass.
    # NOTE: ideally the upstream embedding lookup emits (F, D, B) directly.
    if cast_to is not None and x.dtype != cast_to:
        x = x.astype(cast_to)
    B_pad = _round_up(B, 128)
    if B_pad != B:
        x = jnp.pad(x, ((0, B_pad - B), (0, 0), (0, 0)))
    xt = jnp.transpose(x, (1, 2, 0))                  # (F, D, B_pad)

    # Batch tile: >=2 (and even) tiles when possible so v7x's 2 TCs split the
    # "parallel" axis; no pad to a TB multiple — Pallas masks ragged blocks.
    tb = min(_round_up(block_b, 128),
             _round_up(max(pl.cdiv(B_pad, 2), 1), 128))
    num_tiles = pl.cdiv(B_pad, tb)
    if num_tiles > 2 and num_tiles % 2 == 1:
        tb = _round_up(pl.cdiv(B_pad, num_tiles + 1), 128)
        num_tiles = pl.cdiv(B_pad, tb)

    chunk = _pick_chunk(D, tb, order)

    # Right-sized VMEM request: double-buffered x tile + output row + weights,
    # with 2x headroom (important on v7x's 64 MiB/TC).
    itemsize = jnp.dtype(xt.dtype).itemsize
    needed = 2 * (F * D * tb * itemsize + tb * 4 + order * D * 4)
    vmem_limit = int(min(96 << 20, max(16 << 20, 2 * needed + (2 << 20))))

    kernel = functools.partial(_interaction_machine_kernel, order=order,
                               num_fields=F, chunk=chunk)

    y_row = pl.pallas_call(
        kernel,
        out_shape=jax.ShapeDtypeStruct((1, B_pad), jnp.float32),
        grid_spec=pltpu.PrefetchScalarGridSpec(
            num_scalar_prefetch=0,
            grid=(num_tiles,),
            in_specs=[
                # X tile streams per batch tile (double-buffered by Pallas).
                pl.BlockSpec((F, D, tb), lambda i: (0, 0, i)),
                # Weights constant across the grid -> resident in VMEM.
                pl.BlockSpec((order, D, 1), lambda i: (0, 0, 0)),
                # Bias scalar in SMEM.
                pl.BlockSpec(memory_space=pltpu.MemorySpace.SMEM),
            ],
            out_specs=pl.BlockSpec((1, tb), lambda i: (0, i)),
        ),
        compiler_params=pltpu.CompilerParams(
            dimension_semantics=("parallel",),
            vmem_limit_bytes=vmem_limit,
        ),
    )(xt, w, b)

    return y_row[0, :B].reshape(B, 1)


def _reference(x, fc_weight, fc_bias, *, order: int):
    """Pure-JAX mirror of the PyTorch forward (batch_norm=None)."""
    X = x.astype(jnp.float32)
    out = []
    Q = X
    p1 = Q.sum(axis=1)
    out.append(p1)
    if order >= 2:
        Q = Q * X
        p2 = Q.sum(axis=1)
        out.append((p1 ** 2 - p2) / 2)
    if order >= 3:
        Q = Q * X
        p3 = Q.sum(axis=1)
        out.append((p1 ** 3 - 3 * p1 * p2 + 2 * p3) / 6)
    if order >= 4:
        Q = Q * X
        p4 = Q.sum(axis=1)
        out.append((p1 ** 4 - 6 * p1 ** 2 * p2 + 3 * p2 ** 2
                    + 8 * p1 * p3 - 6 * p4) / 24)
    if order >= 5:
        Q = Q * X
        p5 = Q.sum(axis=1)
        out.append((p1 ** 5 - 10 * p1 ** 3 * p2 + 20 * p1 ** 2 * p3
                    - 30 * p1 * p4 - 20 * p2 * p3
                    + 15 * p1 * p2 ** 2 + 24 * p5) / 120)
    feat = jnp.concatenate(out, axis=-1)
    y = jnp.sum(feat * fc_weight.astype(jnp.float32)[0], axis=-1, keepdims=True)
    return y + fc_bias.astype(jnp.float32)


if __name__ == "__main__":
    key = jax.random.PRNGKey(0)
    F, D = 6, 32

    # (batch, order, input cast): bf16 default path, a multi-tile ragged-block
    # case, and an f32 path for a quantization-free check.
    configs = [
        (8, 2, jnp.bfloat16),
        (8, 5, jnp.bfloat16),
        (300, 5, jnp.bfloat16),   # 2 tiles, ragged last block
        (8, 5, None),             # float32 input path
    ]
    for B, order, cast_to in configs:
        key, kx, kw, kb = jax.random.split(key, 4)
        x = jax.random.normal(kx, (B, F, D), dtype=jnp.float32)
        bound = 1.0 / float(order * D) ** 0.5   # nn.Linear-style init range
        fc_weight = jax.random.uniform(kw, (1, order * D), jnp.float32,
                                       -bound, bound)
        fc_bias = jax.random.uniform(kb, (1,), jnp.float32, -bound, bound)

        y = interaction_machine(x, fc_weight, fc_bias, order=order,
                                cast_to=cast_to)
        y = jax.block_until_ready(y)

        # Compare against a reference fed the same (possibly bf16-quantized)
        # input so the check validates the kernel math, not the quantization.
        x_ref_in = x if cast_to is None else x.astype(cast_to).astype(jnp.float32)
        y_ref = _reference(x_ref_in, fc_weight, fc_bias, order=order)

        assert y.shape == (B, 1)
        assert jnp.allclose(y, y_ref, atol=2e-3, rtol=2e-3), (B, order, cast_to)

    print("KERNEL_OK")
</pallas_src>

<mosaic_0001>
module attributes {stable_mosaic.version = 11 : i64} {
  func.func @_interaction_machine_kernel(%arg0: i32, %arg1: memref<6x32x128xbf16, #tpu.memory_space<vmem>>, %arg2: memref<2x32x1xf32, #tpu.memory_space<vmem>>, %arg3: memref<1x1xf32, #tpu.memory_space<smem>>, %arg4: memref<1x128xf32, #tpu.memory_space<vmem>>) attributes {dimension_semantics = [#tpu.dimension_semantics<parallel>], iteration_bounds = array<i64: 1>, scalar_prefetch = 0 : i64, scratch_operands = 0 : i64, tpu.core_type = #tpu.core_type<tc>, window_params = [{transform_indices = @transform_0, window_bounds = array<i64: 6, 32, 128>}, {pipeline_mode = #tpu.pipeline_mode<synchronous>, transform_indices = @transform_1, window_bounds = array<i64: 2, 32, 1>}, {transform_indices = @transform_2, window_bounds = array<i64: 1, 1>}, {transform_indices = @transform_3, window_bounds = array<i64: 1, 128>}]} {
    %c0 = arith.constant 0 : index
    %c0_0 = arith.constant 0 : index
    %0 = memref.load %arg3[%c0, %c0_0] : memref<1x1xf32, #tpu.memory_space<smem>>
    %c0_1 = arith.constant 0 : index
    %c0_2 = arith.constant 0 : index
    %c0_3 = arith.constant 0 : index
    %1 = vector.load %arg2[%c0_1, %c0_2, %c0_3] : memref<2x32x1xf32, #tpu.memory_space<vmem>>, vector<1x32x1xf32>
    %2 = vector.shape_cast %1 : vector<1x32x1xf32> to vector<32x1xf32>
    %3 = vector.shape_cast %2 : vector<32x1xf32> to vector<32x1xf32>
    %4 = vector.broadcast %3 : vector<32x1xf32> to vector<32x128xf32>
    %c1 = arith.constant 1 : index
    %c0_4 = arith.constant 0 : index
    %c0_5 = arith.constant 0 : index
    %5 = vector.load %arg2[%c1, %c0_4, %c0_5] : memref<2x32x1xf32, #tpu.memory_space<vmem>>, vector<1x32x1xf32>
    %6 = vector.shape_cast %5 : vector<1x32x1xf32> to vector<32x1xf32>
    %7 = vector.shape_cast %6 : vector<32x1xf32> to vector<32x1xf32>
    %8 = vector.broadcast %7 : vector<32x1xf32> to vector<32x128xf32>
    %c0_i32 = arith.constant 0 : i32
    %c1_i32 = arith.constant 1 : i32
    %9 = arith.muli %c0_i32, %c1_i32 : i32
    %c0_i32_6 = arith.constant 0 : i32
    %10 = arith.addi %c0_i32_6, %9 : i32
    %c128_i32 = arith.constant 128 : i32
    %11 = arith.muli %10, %c128_i32 : i32
    %12 = tpu.assume_multiple %11, 128 : i32
    %c0_7 = arith.constant 0 : index
    %c0_8 = arith.constant 0 : index
    %13 = arith.index_cast %12 : i32 to index
    %14 = vector.load %arg1[%c0_7, %c0_8, %13] : memref<6x32x128xbf16, #tpu.memory_space<vmem>>, vector<1x32x128xbf16>
    %15 = vector.shape_cast %14 : vector<1x32x128xbf16> to vector<32x128xbf16>
    %16 = arith.extf %15 : vector<32x128xbf16> to vector<32x128xf32>
    %17 = arith.mulf %16, %16 : vector<32x128xf32>
    %c1_9 = arith.constant 1 : index
    %c0_10 = arith.constant 0 : index
    %18 = arith.index_cast %12 : i32 to index
    %19 = vector.load %arg1[%c1_9, %c0_10, %18] : memref<6x32x128xbf16, #tpu.memory_space<vmem>>, vector<1x32x128xbf16>
    %20 = vector.shape_cast %19 : vector<1x32x128xbf16> to vector<32x128xbf16>
    %21 = arith.extf %20 : vector<32x128xbf16> to vector<32x128xf32>
    %22 = arith.addf %16, %21 : vector<32x128xf32>
    %23 = arith.mulf %21, %21 : vector<32x128xf32>
    %24 = arith.addf %17, %23 : vector<32x128xf32>
    %c2 = arith.constant 2 : index
    %c0_11 = arith.constant 0 : index
    %25 = arith.index_cast %12 : i32 to index
    %26 = vector.load %arg1[%c2, %c0_11, %25] : memref<6x32x128xbf16, #tpu.memory_space<vmem>>, vector<1x32x128xbf16>
    %27 = vector.shape_cast %26 : vector<1x32x128xbf16> to vector<32x128xbf16>
    %28 = arith.extf %27 : vector<32x128xbf16> to vector<32x128xf32>
    %29 = arith.addf %22, %28 : vector<32x128xf32>
    %30 = arith.mulf %28, %28 : vector<32x128xf32>
    %31 = arith.addf %24, %30 : vector<32x128xf32>
    %c3 = arith.constant 3 : index
    %c0_12 = arith.constant 0 : index
    %32 = arith.index_cast %12 : i32 to index
    %33 = vector.load %arg1[%c3, %c0_12, %32] : memref<6x32x128xbf16, #tpu.memory_space<vmem>>, vector<1x32x128xbf16>
    %34 = vector.shape_cast %33 : vector<1x32x128xbf16> to vector<32x128xbf16>
    %35 = arith.extf %34 : vector<32x128xbf16> to vector<32x128xf32>
    %36 = arith.addf %29, %35 : vector<32x128xf32>
    %37 = arith.mulf %35, %35 : vector<32x128xf32>
    %38 = arith.addf %31, %37 : vector<32x128xf32>
    %c4 = arith.constant 4 : index
    %c0_13 = arith.constant 0 : index
    %39 = arith.index_cast %12 : i32 to index
    %40 = vector.load %arg1[%c4, %c0_13, %39] : memref<6x32x128xbf16, #tpu.memory_space<vmem>>, vector<1x32x128xbf16>
    %41 = vector.shape_cast %40 : vector<1x32x128xbf16> to vector<32x128xbf16>
    %42 = arith.extf %41 : vector<32x128xbf16> to vector<32x128xf32>
    %43 = arith.addf %36, %42 : vector<32x128xf32>
    %44 = arith.mulf %42, %42 : vector<32x128xf32>
    %45 = arith.addf %38, %44 : vector<32x128xf32>
    %c5 = arith.constant 5 : index
    %c0_14 = arith.constant 0 : index
    %46 = arith.index_cast %12 : i32 to index
    %47 = vector.load %arg1[%c5, %c0_14, %46] : memref<6x32x128xbf16, #tpu.memory_space<vmem>>, vector<1x32x128xbf16>
    %48 = vector.shape_cast %47 : vector<1x32x128xbf16> to vector<32x128xbf16>
    %49 = arith.extf %48 : vector<32x128xbf16> to vector<32x128xf32>
    %50 = arith.addf %43, %49 : vector<32x128xf32>
    %51 = arith.mulf %49, %49 : vector<32x128xf32>
    %52 = arith.addf %45, %51 : vector<32x128xf32>
    %53 = arith.mulf %50, %4 : vector<32x128xf32>
    %54 = arith.mulf %50, %50 : vector<32x128xf32>
    %55 = arith.subf %54, %52 : vector<32x128xf32>
    %cst = arith.constant 5.000000e-01 : f32
    %56 = vector.broadcast %cst : f32 to vector<32x128xf32>
    %57 = arith.mulf %55, %56 : vector<32x128xf32>
    %58 = arith.mulf %57, %8 : vector<32x128xf32>
    %59 = arith.addf %53, %58 : vector<32x128xf32>
    %cst_15 = arith.constant dense<0.000000e+00> : vector<128xf32>
    %60 = vector.multi_reduction <add>, %59, %cst_15 [0] : vector<32x128xf32> to vector<128xf32>
    %61 = vector.shape_cast %60 : vector<128xf32> to vector<1x128xf32>
    %62 = vector.broadcast %0 : f32 to vector<1x128xf32>
    %63 = arith.addf %61, %62 : vector<1x128xf32>
    %c0_16 = arith.constant 0 : index
    %64 = arith.index_cast %12 : i32 to index
    %65 = vector.load %arg4[%c0_16, %64] : memref<1x128xf32, #tpu.memory_space<vmem>>, vector<1x128xf32>
    tpu.vector_store %arg4[%c0_16, %64], %63 {strides = array<i32>} : memref<1x128xf32, #tpu.memory_space<vmem>>, vector<1x128xf32>,
    %c1_i32_17 = arith.constant 1 : i32
    return
  }
  func.func @transform_0(%arg0: i32) -> (i32, i32, i32) {
    %c0_i32 = arith.constant 0 : i32
    %c0_i32_0 = arith.constant 0 : i32
    %c0_i32_1 = arith.constant 0 : i32
    return %c0_i32, %c0_i32_0, %arg0 : i32, i32, i32
  }
  func.func @transform_1(%arg0: i32) -> (i32, i32, i32) {
    %c0_i32 = arith.constant 0 : i32
    %c0_i32_0 = arith.constant 0 : i32
    %c0_i32_1 = arith.constant 0 : i32
    %c0_i32_2 = arith.constant 0 : i32
    return %c0_i32, %c0_i32_0, %c0_i32_1 : i32, i32, i32
  }
  func.func @transform_2(%arg0: i32) -> (i32, i32) {
    %c0_i32 = arith.constant 0 : i32
    %c0_i32_0 = arith.constant 0 : i32
    %c0_i32_1 = arith.constant 0 : i32
    return %c0_i32, %c0_i32_0 : i32, i32
  }
  func.func @transform_3(%arg0: i32) -> (i32, i32) {
    %c0_i32 = arith.constant 0 : i32
    %c0_i32_0 = arith.constant 0 : i32
    return %c0_i32, %arg0 : i32, i32
  }
}

</mosaic_0001>

<bundles_post_ra>
// kernel: tpu_custom_call.1
= control target key start
LH: loop header
LB: loop body
LE: loop exit
PB: predicated region body
PF: predicated region fallthrough
CT: control target
= control target key end

     0   :  { %9 = vsyncpa [#allocation4], 0  ;;  %s475_s0 = inlined_call_operand.hbm [shape: bf16[6,32,128], index: 0, kind: input, shape index: {}]   ;;  %s476_s1 = inlined_call_operand.vmem [shape: f32[2,32,1], index: 1, kind: input, shape index: {}]   ;;  %s477_s2 = inlined_call_operand.<no memory space> [shape: f32[1,1], index: 2, kind: input, shape index: {}]   ;;  %s478_s3 = inlined_call_operand.hbm [shape: f32[1,128], index: 3, kind: output, shape index: {}]  }
   0x1   :  { %10 = vsyncpa [#allocation5], 0  ;;  %s416_s12 = smov [#allocation3]  }
   0x2   :  { %s16_s13 = sshll.u32 %s416_s12, 4  ;;  %s17_s13 = int_to_ptr.vmem [resolvable:$true] %s16_s13 }
   0x3   :  { %s336_s14 = scalar_lea.vmem %s17_s13, 1536  ;;  %p341_p1 = scmp.lt.s32.totalorder %s17_s13, %s17_s13 }
   0x4   :  { %p337_p0 = scmp.ne.s32.totalorder %s17_s13, %s336_s14  ;;  %p342_p2 = scmp.lt.s32.totalorder %s336_s14, %s336_s14 }
   0x6   :  { %p343_p3 = por %p342_p2, %p341_p1 }
   0x8   :  { %p344_p4 = pnand %p343_p3, %p337_p0 }
   0xa   :  { %347 = shalt.err (!%p344_p4)
}
   0xb   :  { %s417_s15 = smov 64   ;;  %s418_s16 = smov 4  }
   0xc   :  { %22 = dma.hbm_to_vmem [thread:$0]  %s475_s0, 1536, %s17_s13, [#allocation4], %s417_s15, %s417_s15, %s418_s16  }
   0xd   :  { %368 = dma.done.wait [#allocation4], 1536  }
   0xe   :  { %369 = vsyncadd [#allocation4], 4294965760  ;;  %v419_v0 = vmov 0   ;;  %v263_v1 = vld [vmem:[%s476_s1 + $0x20] sm:$0xff]  ;;  %v264_v3 = vld [vmem:[%s476_s1 + $0x28] sm:$0xff]  ;;  %s421_s8 = smov [#allocation6]  }
   0xf   :  { %327 = vset.pattern.permute.xlu1 %v419_v0  ;;  %326 = vset.pattern.permute.xlu0 %v419_v0  ;;  %v31_v2 = vld [vmem:[%s476_s1] sm:$0xff]  ;;  %v32_v4 = vld [vmem:[%s476_s1 + $0x8] sm:$0xff]  ;;  %v265_v5 = vld [vmem:[%s476_s1 + $0x30] sm:$0xff]  ;;  %s249_s9 = sshll.u32 %s421_s8, 4  ;;  %s250_s9 = int_to_ptr.vmem [resolvable:$true] %s249_s9 }
  0x10   :  { %62 = vperm.xlu1 %327, %v263_v1   ;;  %37 = vperm.xlu0 %326, %v31_v2   ;;  %v33_v6 = vld [vmem:[%s476_s1 + $0x10] sm:$0xff]  ;;  %v266_v7 = vld [vmem:[%s476_s1 + $0x38] sm:$0xff]  ;;  %v268_v9 = vld [vmem:[#allocation3] sm:$0xff]   ;;  %v420_v1 = vmov 1935823168   ;;  %s348_s10 = scalar_lea.vmem %s250_s9, 16  ;;  %p353_p6 = scmp.lt.s32.totalorder %s250_s9, %s250_s9 }
  0x11   :  { %v34_v8 = vld [vmem:[%s476_s1 + $0x18] sm:$0xff]  ;;  %v276_v10 = vld [vmem:[#allocation3 + $0x10] sm:$0xff]   ;;  %v270_v11 = vunpack.c.h.bf16 %v268_v9  ;;  %v315_v13 = vld [vmem:[#allocation3 + $0x8] sm:$0xff]   ;;  %v269_v15 = vunpack.c.l.bf16 %v268_v9  ;;  %394 = vmul.bf16.f32.vacc1 %v268_v9, %v268_v9  ;;  %v404_v2 = vunpack.c.l.s4 %v420_v1  ;;  %p349_p5 = scmp.ne.s32.totalorder %s250_s9, %s348_s10  ;;  %s352_s11 = scalar_lea.vmem %s250_s9, 32 }
  0x12   :  { %v278_v12 = vunpack.c.h.bf16 %v276_v10  ;;  %v316_v14 = vld [vmem:[#allocation3 + $0x18] sm:$0xff]   ;;  %v277_v16 = vunpack.c.l.bf16 %v276_v10  ;;  %v284_v17 = vld [vmem:[#allocation3 + $0x20] sm:$0xff]   ;;  %v273_v20 = vunpack.c.l.bf16 %v315_v13  ;;  %v317_v22 = vld [vmem:[#allocation3 + $0x28] sm:$0xff]   ;;  %395 = vmac.bf16.f32.vacc1 %v276_v10, %v276_v10  ;;  %p354_p7 = scmp.lt.s32.totalorder %s352_s11, %s348_s10 }
  0x13   :  { %v286_v19 = vunpack.c.h.bf16 %v284_v17  ;;  %v281_v21 = vunpack.c.l.bf16 %v316_v14  ;;  %v285_v24 = vunpack.c.l.bf16 %v284_v17  ;;  %v292_v25 = vld [vmem:[#allocation3 + $0x30] sm:$0xff]   ;;  %v289_v29 = vunpack.c.l.bf16 %v317_v22  ;;  %v318_v30 = vld [vmem:[#allocation3 + $0x38] sm:$0xff]   ;;  %v300_v35 = vld [vmem:[#allocation3 + $0x40] sm:$0xff]  }
  0x14   :  { %67 = vperm.xlu1 %327, %v264_v3   ;;  %42 = vperm.xlu0 %326, %v32_v4   ;;  %v104_v18 = vadd.f32 %v278_v12, %v270_v11  ;;  %v103_v23 = vadd.f32 %v277_v16, %v269_v15  ;;  %v294_v27 = vunpack.c.h.bf16 %v292_v25  ;;  %v274_v31 = vunpack.c.h.bf16 %v315_v13  ;;  %v308_v40 = vld [vmem:[#allocation3 + $0x50] sm:$0xff]   ;;  %v319_v41 = vld [vmem:[#allocation3 + $0x48] sm:$0xff]   ;;  %v320_v50 = vld [vmem:[#allocation3 + $0x58] sm:$0xff]   ;;  %p355_p8 = por %p354_p7, %p353_p6 }
  0x15   :  { %v105_v28 = vadd.f32 %v281_v21, %v273_v20  ;;  %v282_v32 = vunpack.c.h.bf16 %v316_v14  ;;  %v293_v34 = vunpack.c.l.bf16 %v292_v25  ;;  %396 = vmac.bf16.f32.vacc1 %v284_v17, %v284_v17 }
  0x16   :  { %v127_v26 = vadd.f32 %v286_v19, %v104_v18  ;;  %v126_v33 = vadd.f32 %v285_v24, %v103_v23  ;;  %v302_v37 = vunpack.c.h.bf16 %v300_v35  ;;  %372 = vmul.bf16.f32.vacc0 %v315_v13, %v315_v13  ;;  %p356_p9 = pnand %p355_p8, %p349_p5 }
  0x17   :  { %373 = vmac.bf16.f32.vacc0 %v316_v14, %v316_v14  ;;  %v128_v38 = vadd.f32 %v289_v29, %v105_v28  ;;  %v297_v39 = vunpack.c.l.bf16 %v318_v30  ;;  %v106_v42 = vadd.f32 %v282_v32, %v274_v31 }
  0x18   :  { %72 = vperm.xlu1 %327, %v265_v5   ;;  %47 = vperm.xlu0 %326, %v33_v6   ;;  %v150_v36 = vadd.f32 %v294_v27, %v127_v26  ;;  %v290_v43 = vunpack.c.h.bf16 %v317_v22  ;;  %v301_v44 = vunpack.c.l.bf16 %v300_v35  ;;  %v310_v45 = vunpack.c.h.bf16 %v308_v40 }
  0x19   :  { %v149_v46 = vadd.f32 %v293_v34, %v126_v33  ;;  %397 = vmac.bf16.f32.vacc1 %v292_v25, %v292_v25  ;;  %374 = vmac.bf16.f32.vacc0 %v317_v22, %v317_v22  ;;  %v151_v48 = vadd.f32 %v297_v39, %v128_v38 }
  0x1a   :  { %v173_v47 = vadd.f32 %v302_v37, %v150_v36  ;;  %v305_v49 = vunpack.c.l.bf16 %v319_v41  ;;  %v129_v51 = vadd.f32 %v290_v43, %v106_v42  ;;  %v298_v52 = vunpack.c.h.bf16 %v318_v30 }
  0x1b   :  { %v309_v53 = vunpack.c.l.bf16 %v308_v40  ;;  %v172_v54 = vadd.f32 %v301_v44, %v149_v46  ;;  %398 = vmac.bf16.f32.vacc1 %v300_v35, %v300_v35  ;;  %375 = vmac.bf16.f32.vacc0 %v318_v30, %v318_v30 }
  0x1c   :  { %77 = vperm.xlu1 %327, %v266_v7   ;;  %52 = vperm.xlu0 %326, %v34_v8   ;;  %v196_v55 = vadd.f32 %v310_v45, %v173_v47  ;;  %v174_v56 = vadd.f32 %v305_v49, %v151_v48  ;;  %v313_v57 = vunpack.c.l.bf16 %v320_v50  ;;  %v152_v58 = vadd.f32 %v298_v52, %v129_v51 }
  0x1d   :  { %v306_v59 = vunpack.c.h.bf16 %v319_v41  ;;  %v195_v60 = vadd.f32 %v309_v53, %v172_v54  ;;  %399 = vmac.bf16.f32.vacc1 %v308_v40, %v308_v40  ;;  %v405_v3 = vunpack.c.0.s8 %v404_v2 }
  0x1e   :  { %v406_v4 = vlaneseq  ;;  %v212_v9 = vmul.f32 %v196_v55, %v196_v55  ;;  %376 = vmac.bf16.f32.vacc0 %v319_v41, %v319_v41  ;;  %v197_v10 = vadd.f32 %v313_v57, %v174_v56 }
  0x1f   :  { %v400_v61 = vmovacc.add.low.vacc1  ;;  %v175_v11 = vadd.f32 %v306_v59, %v152_v58  ;;  %v314_v12 = vunpack.c.h.bf16 %v320_v50  ;;  %v211_v13 = vmul.f32 %v195_v60, %v195_v60 }
  0x20   :  { %v401_v62 = vmovacc.add.high.vacc1  ;;  %v407_v5 = vshrl.u32 %v406_v4, 7  ;;  %377 = vmac.bf16.f32.vacc0 %v320_v50, %v320_v50  ;;  %v213_v21 = vmul.f32 %v197_v10, %v197_v10 }
  0x21   :  { %v198_v22 = vadd.f32 %v314_v12, %v175_v11  ;;  %v240_v59 = vstv %s477_s2 }
  0x22   :  { %v402_v63 = vcombine.low %v400_v61, %v401_v62  ;;  %v403_v0 = vcombine.high %v400_v61, %v401_v62  ;;  %v408_v6 = vsub.s32 %v405_v3, %v407_v5  ;;  %v378_v15 = vmovacc.add.low.vacc0 }
  0x23   :  { %v379_v16 = vmovacc.add.high.vacc0  ;;  %v214_v28 = vmul.f32 %v198_v22, %v198_v22 }
  0x24   :  { %v409_v7 = vrot.slane %v402_v63, %v408_v6  ;;  %v415_v8 = vrot.slane %v403_v0, %v408_v6 }
  0x25   :  { %v380_v17 = vcombine.low %v378_v15, %v379_v16  ;;  %v381_v18 = vcombine.high %v378_v15, %v379_v16 }
  0x26   :  { %v216_v14 = vsub.f32 %v212_v9, %v415_v8  ;;  %v215_v23 = vsub.f32 %v211_v13, %v409_v7 }
  0x27   :  { %v387_v19 = vrot.slane %v380_v17, %v408_v6  ;;  %v393_v20 = vrot.slane %v381_v18, %v408_v6 }
  0x28   :  { %v220_v26 = vmul.f32 0.5, %v216_v14  ;;  %v219_v29 = vmul.f32 0.5, %v215_v23 }
  0x29   :  { %v217_v27 = vsub.f32 %v213_v21, %v387_v19  ;;  %v218_v35 = vsub.f32 %v214_v28, %v393_v20 }
  0x2b   :  { %v221_v34 = vmul.f32 0.5, %v217_v27  ;;  %v222_v43 = vmul.f32 0.5, %v218_v35 }
  0x8b   :  { %v63_v24 = vpop.permute.xlu1 %62  ;;  %v38_v25 = vpop.permute.xlu0 %37 }
  0x8c   :  { %v223_v36 = vmul.f32 %v219_v29, %v63_v24  ;;  %v207_v37 = vmul.f32 %v195_v60, %v38_v25 }
  0x8e   :  { %v227_v44 = vadd.f32 %v223_v36, %v207_v37 }
  0x8f   :  { %v68_v30 = vpop.permute.xlu1 %67  ;;  %v43_v31 = vpop.permute.xlu0 %42 }
  0x90   :  { %v224_v32 = vmul.f32 %v220_v26, %v68_v30  ;;  %v208_v33 = vmul.f32 %v196_v55, %v43_v31 }
  0x92   :  { %v228_v40 = vadd.f32 %v224_v32, %v208_v33 }
  0x93   :  { %v73_v38 = vpop.permute.xlu1 %72  ;;  %v48_v39 = vpop.permute.xlu0 %47 }
  0x94   :  { %v225_v41 = vmul.f32 %v221_v34, %v73_v38  ;;  %v209_v42 = vmul.f32 %v197_v10, %v48_v39  ;;  %v231_v48 = vadd.f32 %v228_v40, %v227_v44 }
  0x96   :  { %v229_v45 = vadd.f32 %v225_v41, %v209_v42 }
  0x97   :  { %v78_v46 = vpop.permute.xlu1 %77  ;;  %v53_v47 = vpop.permute.xlu0 %52 }
  0x98   :  { %v226_v49 = vmul.f32 %v222_v43, %v78_v46  ;;  %v210_v50 = vmul.f32 %v198_v22, %v53_v47  ;;  %v232_v51 = vadd.f32 %v231_v48, %v229_v45 }
  0x9a   :  { %v230_v52 = vadd.f32 %v226_v49, %v210_v50 }
  0x9c   :  { %v233_v53 = vadd.f32 %v232_v51, %v230_v52 }
  0x9e   :  { %v234_v54 = vrot.slane %v233_v53, 4 }
  0xa0   :  { %v235_v55 = vadd.f32 %v234_v54, %v233_v53 }
  0xa2   :  { %v236_v56 = vrot.slane %v235_v55, 2 }
  0xa4   :  { %v237_v57 = vadd.f32 %v236_v56, %v235_v55 }
  0xa6   :  { %v238_v58 = vrot.slane %v237_v57, 1 }
  0xa8   :  { %v239_v60 = vadd.f32 %v238_v58, %v237_v57 }
  0xaa   :  { %v241_v61 = vadd.f32 %v240_v59, %v239_v60 }
  0xac   :  { %242 = vst [vmem:[#allocation6] sm:$0x1] %v241_v61 }
  0xad   :  { %359 = shalt.err (!%p356_p9)
}
  0xae   :  { %252 = dma.vmem_to_hbm [thread:$0]  %s250_s9, 16, %s478_s3, [#allocation5]  }
  0xaf   :  { %370 = dma.done.wait [#allocation5], 16  }
  0xb0   :  { %371 = vsyncadd [#allocation5], 4294967280 }
  0xb1   :  { %256 = vsyncpa [#allocation4], 1 }
  0xb2   :  { %257 = vsyncpa [#allocation5], 1 }

</bundles_post_ra>
